<compile_context>
chip_gen: v7x
topology: tpu7x:2x2x1
jax: 0.10.0
libtpu: 0.0.40
codegen_flags: <defaults>
</compile_context>

<pallas_src>
import jax
import jax.numpy as jnp
from jax.experimental import pallas as pl
from jax.experimental.pallas import tpu as pltpu

_LANES = 128            # lane-dense last dim -> unmasked full-vreg stores
_MAX_BLOCK_ROWS = 4096  # (4096, 128) f32 block = 2 MiB per pipeline buffer


def print_layer(x: jax.Array, msg: str) -> jax.Array:
    """Faithful PrintLayer.forward: host-side print of the static shape, identity return.

    No device work: identity needs no kernel, so this is the zero-overhead hot path.
    """
    print(msg, tuple(x.shape))
    return x


def _copy_kernel(x_ref, o_ref):
    o_ref[...] = x_ref[...]


@jax.jit
def _copy_device(x: jax.Array) -> jax.Array:
    """Materialize a fresh copy of x via a tiled, lane-dense Pallas copy kernel."""
    total = x.size
    flat = x.reshape(-1)

    # Lane-dense 2D layout: last dim = 128 lanes. Pad only the ragged tail of
    # the final 128-lane row (at most 127 elements); no padding at all when
    # total is already a multiple of 128.
    rows = pl.cdiv(total, _LANES)
    padded_total = rows * _LANES
    needs_pad = padded_total != total
    if needs_pad:
        flat = jnp.pad(flat, (0, padded_total - total))
    x2d = flat.reshape(rows, _LANES)

    if rows <= _MAX_BLOCK_ROWS:
        # Single block equal to the full array dims (always a legal block shape).
        block_rows = rows
    else:
        # Multiple-of-8 block; Pallas masks the ragged last block if rows is
        # not a multiple of block_rows (no extra padding pass needed).
        block_rows = _MAX_BLOCK_ROWS
    grid = (pl.cdiv(rows, block_rows),)

    y2d = pl.pallas_call(
        _copy_kernel,
        out_shape=jax.ShapeDtypeStruct(x2d.shape, x2d.dtype),
        grid_spec=pltpu.PrefetchScalarGridSpec(
            num_scalar_prefetch=0,
            grid=grid,
            in_specs=[pl.BlockSpec((block_rows, _LANES), lambda i: (i, 0))],
            out_specs=pl.BlockSpec((block_rows, _LANES), lambda i: (i, 0)),
        ),
        compiler_params=pltpu.CompilerParams(
            # Neutral on v5e/v6e; shards multi-block grids across v7x's 2 TCs.
            dimension_semantics=("parallel",),
        ),
    )(x2d)

    y = y2d.reshape(-1)
    if needs_pad:
        y = y[:total]
    return y.reshape(x.shape)


def print_layer_copy(x: jax.Array, msg: str) -> jax.Array:
    """PrintLayer variant that also returns a freshly materialized copy of x."""
    print(msg, tuple(x.shape))  # host-side print, kept outside jit
    return _copy_device(x)


if __name__ == "__main__":
    key = jax.random.PRNGKey(0)
    # Small NCHW input consistent with an AlexNet-style conv feature map.
    x = jax.random.normal(key, (2, 4, 16, 16), dtype=jnp.float32)

    # Hot path: pure identity, no device work (matches the module's forward).
    y_fast = print_layer(x, "PrintLayer:")
    assert y_fast.shape == x.shape and y_fast.dtype == x.dtype

    # Optimized copy-kernel variant (exercises the Pallas path once).
    y = print_layer_copy(x, "PrintLayer (copy):")
    y = jax.block_until_ready(y)

    assert y.shape == x.shape and y.dtype == x.dtype
    assert bool(jnp.all(y == x))
    print("KERNEL_OK")
</pallas_src>

<mosaic_0001>
module attributes {stable_mosaic.version = 11 : i64} {
  func.func @_copy_kernel(%arg0: i32, %arg1: memref<16x128xf32, #tpu.memory_space<vmem>>, %arg2: memref<16x128xf32, #tpu.memory_space<vmem>>) attributes {dimension_semantics = [#tpu.dimension_semantics<parallel>], iteration_bounds = array<i64: 1>, scalar_prefetch = 0 : i64, scratch_operands = 0 : i64, tpu.core_type = #tpu.core_type<tc>, window_params = [{transform_indices = @transform_0, window_bounds = array<i64: 16, 128>}, {transform_indices = @transform_1, window_bounds = array<i64: 16, 128>}]} {
    %c0 = arith.constant 0 : index
    %c0_0 = arith.constant 0 : index
    %0 = vector.load %arg1[%c0, %c0_0] : memref<16x128xf32, #tpu.memory_space<vmem>>, vector<16x128xf32>
    %c0_1 = arith.constant 0 : index
    %c0_2 = arith.constant 0 : index
    %1 = vector.load %arg2[%c0_1, %c0_2] : memref<16x128xf32, #tpu.memory_space<vmem>>, vector<16x128xf32>
    tpu.vector_store %arg2[%c0_1, %c0_2], %0 {strides = array<i32>} : memref<16x128xf32, #tpu.memory_space<vmem>>, vector<16x128xf32>,
    return
  }
  func.func @transform_0(%arg0: i32) -> (i32, i32) {
    %c0_i32 = arith.constant 0 : i32
    %c0_i32_0 = arith.constant 0 : i32
    return %arg0, %c0_i32 : i32, i32
  }
  func.func @transform_1(%arg0: i32) -> (i32, i32) {
    %c0_i32 = arith.constant 0 : i32
    %c0_i32_0 = arith.constant 0 : i32
    return %arg0, %c0_i32 : i32, i32
  }
}

</mosaic_0001>

<bundles_post_ra>
// kernel: _copy_device.1
= control target key start
LH: loop header
LB: loop body
LE: loop exit
PB: predicated region body
PF: predicated region fallthrough
CT: control target
= control target key end

     0   :  { %s38_s0 = inlined_call_operand.vmem [shape: f32[16,128], index: 0, kind: input, shape index: {}]   ;;  %s39_s1 = inlined_call_operand.vmem [shape: f32[16,128], index: 1, kind: output, shape index: {}]  }
   0x1   :  { %v8_v0 = vld [vmem:[%s38_s0] sm:$0xff]  ;;  %v9_v1 = vld [vmem:[%s38_s0 + $0x8] sm:$0xff] }
   0x2   :  { %10 = vst [vmem:[%s39_s1] sm:$0xff] %v8_v0  ;;  %11 = vst [vmem:[%s39_s1 + $0x8] sm:$0xff] %v9_v1 }

</bundles_post_ra>
